<compile_context>
chip_gen: v5e
topology: v5e:2x2
jax: 0.10.0
libtpu: 0.0.40
codegen_flags: <defaults>
</compile_context>

<pallas_src>
import jax
import jax.numpy as jnp
from jax.experimental import pallas as pl
from jax.experimental.pallas import tpu as pltpu


def _mil_kernel(x_ref, fuse_ref, wb_ref, bb_ref, wf_ref, bf_ref, out_ref):
    """One grid step == one tile of `bags` bags (bag-major instance rows).

    x_ref    : (bags*I, D_in)  bf16  instance features of this tile
    fuse_ref : (bags*I, F)     bf16  fuse features of this tile
    wb_ref   : (D_in, E_pad)   bf16  backbone linear weight
    bb_ref   : (1, E_pad)      f32   backbone linear bias
    wf_ref   : (F, E_pad)      bf16  fuser linear weight
    bf_ref   : (1, E_pad)      f32   fuser linear bias
    out_ref  : (bags, E_pad)   f32   pooled bag representations
    """
    bags, e_pad = out_ref.shape
    rows = x_ref.shape[0]
    inst = rows // bags
    f_dim = fuse_ref.shape[1]

    # ---- backbone: Linear + ReLU over all instance rows (one MXU push) -----
    h = jnp.dot(x_ref[...], wb_ref[...], preferred_element_type=jnp.float32)
    h = jnp.maximum(h + bb_ref[...], 0.0)                       # (rows, E_pad) f32

    # ---- mean-MIL pooling of the backbone branch, per bag -------------------
    h_pooled = jnp.mean(h.reshape(bags, inst, e_pad), axis=1)   # (bags, E_pad)

    # ---- AdditionFuser branch: mean pooling commutes with the affine fuser,
    #      so pool fuse inputs first, then one small (bags, F)@(F, E) matmul.
    f_pooled = jnp.mean(
        fuse_ref[...].astype(jnp.float32).reshape(bags, inst, f_dim), axis=1)
    f = jnp.dot(f_pooled.astype(wf_ref.dtype), wf_ref[...],
                preferred_element_type=jnp.float32)             # (bags, E_pad)

    out_ref[...] = (h_pooled + f + bf_ref[...]).astype(out_ref.dtype)


def mil_forward(x, fuse, wb, bb, wf, bf, *, num_bags, instances_per_bag,
                bags_per_tile=None):
    """x: (num_bags*I, D_in), fuse: (num_bags*I, F) -> (num_bags, E)."""
    total, d_in = x.shape
    assert total == num_bags * instances_per_bag
    f_dim = fuse.shape[1]
    e_dim = wb.shape[1]
    inst = instances_per_bag

    # Lane-dense output: pad the embedding axis up to a multiple of 128.
    e_pad = ((e_dim + 127) // 128) * 128
    pe = e_pad - e_dim
    wb_p = jnp.pad(wb, ((0, 0), (0, pe))).astype(jnp.bfloat16)
    wf_p = jnp.pad(wf, ((0, 0), (0, pe))).astype(jnp.bfloat16)
    bb_p = jnp.pad(bb, ((0, 0), (0, pe))).astype(jnp.float32)
    bf_p = jnp.pad(bf, ((0, 0), (0, pe))).astype(jnp.float32)

    # MXU-friendly tile: ~256 instance rows per step, sublane/bf16 aligned.
    if bags_per_tile is None:
        bags_per_tile = max(1, 256 // max(inst, 1))
    bags_per_tile = min(bags_per_tile, num_bags)
    if (bags_per_tile * inst) % 16 != 0 or bags_per_tile % 8 != 0:
        # Fall back to one whole-array tile (full-extent blocks are always legal).
        bags_per_tile = num_bags

    num_tiles = pl.cdiv(num_bags, bags_per_tile)
    bags_padded = num_tiles * bags_per_tile
    rows_per_tile = bags_per_tile * inst
    row_pad = (bags_padded - num_bags) * inst

    # bf16 MXU operands; padded bags are zero rows and get sliced off below.
    # NOTE: instances_per_bag itself is never padded, so the per-bag mean is exact.
    x_in = jnp.pad(x, ((0, row_pad), (0, 0))).astype(jnp.bfloat16)
    fuse_in = jnp.pad(fuse, ((0, row_pad), (0, 0))).astype(jnp.bfloat16)

    out = pl.pallas_call(
        _mil_kernel,
        out_shape=jax.ShapeDtypeStruct((bags_padded, e_pad), jnp.float32),
        grid_spec=pltpu.PrefetchScalarGridSpec(
            num_scalar_prefetch=0,
            grid=(num_tiles,),
            in_specs=[
                pl.BlockSpec((rows_per_tile, d_in), lambda b: (b, 0)),   # x tile
                pl.BlockSpec((rows_per_tile, f_dim), lambda b: (b, 0)),  # fuse tile
                pl.BlockSpec((d_in, e_pad), lambda b: (0, 0)),           # backbone W
                pl.BlockSpec((1, e_pad), lambda b: (0, 0)),              # backbone b
                pl.BlockSpec((f_dim, e_pad), lambda b: (0, 0)),          # fuser W
                pl.BlockSpec((1, e_pad), lambda b: (0, 0)),              # fuser b
            ],
            out_specs=pl.BlockSpec((bags_per_tile, e_pad), lambda b: (b, 0)),
        ),
        compiler_params=pltpu.CompilerParams(
            dimension_semantics=("parallel",),   # bag tiles shard across TCs (v7x)
        ),
    )(x_in, fuse_in, wb_p, bb_p, wf_p, bf_p)

    return out[:num_bags, :e_dim]


if __name__ == "__main__":
    # Small shapes consistent with the module's forward:
    #   32 bags x 8 instances, instance feature dim 32,
    #   embedding_dim=32, fused_input_dim=16.
    # BAGS_PER_TILE=16 -> 128 instance rows per grid step, grid=(2,).
    NUM_BAGS = 32
    INSTANCES_PER_BAG = 8
    D_IN = 32
    EMBED_DIM = 32
    FUSED_DIM = 16
    BAGS_PER_TILE = 16

    key = jax.random.PRNGKey(0)
    k_x, k_fuse, k_wb, k_bb, k_wf, k_bf = jax.random.split(key, 6)

    # Inputs (bag-major instance packing).
    x = jax.random.normal(k_x, (NUM_BAGS * INSTANCES_PER_BAG, D_IN), jnp.float32)
    fuse = jax.random.normal(k_fuse, (NUM_BAGS * INSTANCES_PER_BAG, FUSED_DIM), jnp.float32)

    # Deterministic parameters (stored as (in, out) so the kernel does x @ W).
    wb = jax.random.normal(k_wb, (D_IN, EMBED_DIM), jnp.float32) * 0.1
    bb = jax.random.normal(k_bb, (1, EMBED_DIM), jnp.float32) * 0.1
    wf = jax.random.normal(k_wf, (FUSED_DIM, EMBED_DIM), jnp.float32) * 0.1
    bf = jax.random.normal(k_bf, (1, EMBED_DIM), jnp.float32) * 0.1

    out = mil_forward(
        x, fuse, wb, bb, wf, bf,
        num_bags=NUM_BAGS, instances_per_bag=INSTANCES_PER_BAG,
        bags_per_tile=BAGS_PER_TILE,
    )
    out = jax.block_until_ready(out)

    # Pure-JAX f32 reference following the module semantics
    # (backbone -> fuser add -> per-bag mean pooling).
    h_ref = jnp.maximum(x @ wb + bb, 0.0) + (fuse @ wf + bf)
    ref = h_ref.reshape(NUM_BAGS, INSTANCES_PER_BAG, EMBED_DIM).mean(axis=1)

    assert out.shape == (NUM_BAGS, EMBED_DIM)
    # bf16 MXU operands -> allow bf16-level tolerance vs the f32 reference.
    assert jnp.allclose(out, ref, atol=3e-2, rtol=3e-2), float(jnp.abs(out - ref).max())

    print("KERNEL_OK")
</pallas_src>

<mosaic_0001>
module attributes {stable_mosaic.version = 11 : i64} {
  func.func @_mil_kernel(%arg0: i32, %arg1: memref<128x32xbf16, #tpu.memory_space<vmem>>, %arg2: memref<128x16xbf16, #tpu.memory_space<vmem>>, %arg3: memref<32x128xbf16, #tpu.memory_space<vmem>>, %arg4: memref<1x128xf32, #tpu.memory_space<vmem>>, %arg5: memref<16x128xbf16, #tpu.memory_space<vmem>>, %arg6: memref<1x128xf32, #tpu.memory_space<vmem>>, %arg7: memref<16x128xf32, #tpu.memory_space<vmem>>) attributes {dimension_semantics = [#tpu.dimension_semantics<parallel>], iteration_bounds = array<i64: 2>, scalar_prefetch = 0 : i64, scratch_operands = 0 : i64, tpu.core_type = #tpu.core_type<tc>, window_params = [{transform_indices = @transform_0, window_bounds = array<i64: 128, 32>}, {transform_indices = @transform_1, window_bounds = array<i64: 128, 16>}, {pipeline_mode = #tpu.pipeline_mode<synchronous>, transform_indices = @transform_2, window_bounds = array<i64: 32, 128>}, {pipeline_mode = #tpu.pipeline_mode<synchronous>, transform_indices = @transform_3, window_bounds = array<i64: 1, 128>}, {pipeline_mode = #tpu.pipeline_mode<synchronous>, transform_indices = @transform_4, window_bounds = array<i64: 16, 128>}, {pipeline_mode = #tpu.pipeline_mode<synchronous>, transform_indices = @transform_5, window_bounds = array<i64: 1, 128>}, {transform_indices = @transform_6, window_bounds = array<i64: 16, 128>}]} {
    %c0 = arith.constant 0 : index
    %c0_0 = arith.constant 0 : index
    %0 = vector.load %arg1[%c0, %c0_0] : memref<128x32xbf16, #tpu.memory_space<vmem>>, vector<128x32xbf16>
    %c0_1 = arith.constant 0 : index
    %c0_2 = arith.constant 0 : index
    %1 = vector.load %arg3[%c0_1, %c0_2] : memref<32x128xbf16, #tpu.memory_space<vmem>>, vector<32x128xbf16>
    %cst = arith.constant dense<0.000000e+00> : vector<128x128xf32>
    %2 = tpu.matmul %0, %1, %cst {dimension_numbers = #tpu.dot_dimension_numbers<[1], [0], [0], [1], [0, 0, 1, 1], [], []>} : vector<128x32xbf16>, vector<32x128xbf16>, vector<128x128xf32> -> vector<128x128xf32>
    %c0_3 = arith.constant 0 : index
    %c0_4 = arith.constant 0 : index
    %3 = vector.load %arg4[%c0_3, %c0_4] : memref<1x128xf32, #tpu.memory_space<vmem>>, vector<1x128xf32>
    %4 = vector.broadcast %3 : vector<1x128xf32> to vector<128x128xf32>
    %5 = arith.addf %2, %4 : vector<128x128xf32>
    %cst_5 = arith.constant 0.000000e+00 : f32
    %6 = vector.broadcast %cst_5 : f32 to vector<128x128xf32>
    %7 = arith.maximumf %5, %6 : vector<128x128xf32>
    %8 = vector.shape_cast %7 : vector<128x128xf32> to vector<16x8x128xf32>
    %cst_6 = arith.constant dense<0.000000e+00> : vector<16x128xf32>
    %9 = vector.multi_reduction <add>, %8, %cst_6 [1] : vector<16x8x128xf32> to vector<16x128xf32>
    %cst_7 = arith.constant 8.000000e+00 : f32
    %10 = vector.broadcast %cst_7 : f32 to vector<16x128xf32>
    %11 = arith.divf %9, %10 : vector<16x128xf32>
    %c0_8 = arith.constant 0 : index
    %c0_9 = arith.constant 0 : index
    %12 = vector.load %arg2[%c0_8, %c0_9] : memref<128x16xbf16, #tpu.memory_space<vmem>>, vector<128x16xbf16>
    %13 = arith.extf %12 : vector<128x16xbf16> to vector<128x16xf32>
    %14 = vector.shape_cast %13 : vector<128x16xf32> to vector<16x8x16xf32>
    %cst_10 = arith.constant dense<0.000000e+00> : vector<16x16xf32>
    %15 = vector.multi_reduction <add>, %14, %cst_10 [1] : vector<16x8x16xf32> to vector<16x16xf32>
    %cst_11 = arith.constant 8.000000e+00 : f32
    %16 = vector.broadcast %cst_11 : f32 to vector<16x16xf32>
    %17 = arith.divf %15, %16 : vector<16x16xf32>
    %18 = arith.truncf %17 : vector<16x16xf32> to vector<16x16xbf16>
    %c0_12 = arith.constant 0 : index
    %c0_13 = arith.constant 0 : index
    %19 = vector.load %arg5[%c0_12, %c0_13] : memref<16x128xbf16, #tpu.memory_space<vmem>>, vector<16x128xbf16>
    %cst_14 = arith.constant dense<0.000000e+00> : vector<16x128xf32>
    %20 = tpu.matmul %18, %19, %cst_14 {dimension_numbers = #tpu.dot_dimension_numbers<[1], [0], [0], [1], [0, 0, 1, 1], [], []>} : vector<16x16xbf16>, vector<16x128xbf16>, vector<16x128xf32> -> vector<16x128xf32>
    %21 = arith.addf %11, %20 : vector<16x128xf32>
    %c0_15 = arith.constant 0 : index
    %c0_16 = arith.constant 0 : index
    %22 = vector.load %arg6[%c0_15, %c0_16] : memref<1x128xf32, #tpu.memory_space<vmem>>, vector<1x128xf32>
    %23 = vector.broadcast %22 : vector<1x128xf32> to vector<16x128xf32>
    %24 = arith.addf %21, %23 : vector<16x128xf32>
    %c0_17 = arith.constant 0 : index
    %c0_18 = arith.constant 0 : index
    %25 = vector.load %arg7[%c0_17, %c0_18] : memref<16x128xf32, #tpu.memory_space<vmem>>, vector<16x128xf32>
    tpu.vector_store %arg7[%c0_17, %c0_18], %24 {strides = array<i32>} : memref<16x128xf32, #tpu.memory_space<vmem>>, vector<16x128xf32>,
    return
  }
  func.func @transform_0(%arg0: i32) -> (i32, i32) {
    %c0_i32 = arith.constant 0 : i32
    %c0_i32_0 = arith.constant 0 : i32
    return %arg0, %c0_i32 : i32, i32
  }
  func.func @transform_1(%arg0: i32) -> (i32, i32) {
    %c0_i32 = arith.constant 0 : i32
    %c0_i32_0 = arith.constant 0 : i32
    return %arg0, %c0_i32 : i32, i32
  }
  func.func @transform_2(%arg0: i32) -> (i32, i32) {
    %c0_i32 = arith.constant 0 : i32
    %c0_i32_0 = arith.constant 0 : i32
    %c0_i32_1 = arith.constant 0 : i32
    return %c0_i32, %c0_i32_0 : i32, i32
  }
  func.func @transform_3(%arg0: i32) -> (i32, i32) {
    %c0_i32 = arith.constant 0 : i32
    %c0_i32_0 = arith.constant 0 : i32
    %c0_i32_1 = arith.constant 0 : i32
    return %c0_i32, %c0_i32_0 : i32, i32
  }
  func.func @transform_4(%arg0: i32) -> (i32, i32) {
    %c0_i32 = arith.constant 0 : i32
    %c0_i32_0 = arith.constant 0 : i32
    %c0_i32_1 = arith.constant 0 : i32
    return %c0_i32, %c0_i32_0 : i32, i32
  }
  func.func @transform_5(%arg0: i32) -> (i32, i32) {
    %c0_i32 = arith.constant 0 : i32
    %c0_i32_0 = arith.constant 0 : i32
    %c0_i32_1 = arith.constant 0 : i32
    return %c0_i32, %c0_i32_0 : i32, i32
  }
  func.func @transform_6(%arg0: i32) -> (i32, i32) {
    %c0_i32 = arith.constant 0 : i32
    %c0_i32_0 = arith.constant 0 : i32
    return %arg0, %c0_i32 : i32, i32
  }
}

</mosaic_0001>

<bundles_post_ra>
// kernel: tpu_custom_call.1
= control target key start
LH: loop header
LB: loop body
LE: loop exit
PB: predicated region body
PF: predicated region fallthrough
CT: control target
= control target key end

     0   :  { %11 = vsyncpa [#allocation3], 0  ;;  %s1597_s0 = inlined_call_operand.vmem [shape: bf16[256,32], index: 0, kind: input, shape index: {}]   ;;  %s1598_s1 = inlined_call_operand.vmem [shape: bf16[256,16], index: 1, kind: input, shape index: {}]   ;;  %s1599_s2 = inlined_call_operand.vmem [shape: bf16[32,128], index: 2, kind: input, shape index: {}]   ;;  %s1600_s3 = inlined_call_operand.vmem [shape: f32[1,128], index: 3, kind: input, shape index: {}]   ;;  %s1601_s4 = inlined_call_operand.vmem [shape: bf16[16,128], index: 4, kind: input, shape index: {}]   ;;  %s1602_s5 = inlined_call_operand.vmem [shape: f32[1,128], index: 5, kind: input, shape index: {}]   ;;  %s1603_s6 = inlined_call_operand.hbm [shape: f32[32,128], index: 6, kind: output, shape index: {}]  }
   0x1   :  { %13 = vsyncpa [#allocation3 + $0x1], 0  ;;  %s1293_s21 = smov 0   ;;  %s1295_s22 = smov 0  }
   0x2   :  { %s1297_s23 = smov 0   ;;  %s1299_s24 = smov 0  }
   0x3 LB: > { %s1022_s25 = sadd.s32 4294967295, %s1253_s24   ;;  %s1023_s26 = sadd.s32 4294967294, %s1253_s24   ;;  %s1253_s24 = sphi %s1299_s24, %s1609_s24   ;;  %s1249_s23 = sphi %s1297_s23, %s1608_s23   ;;  %s1245_s22 = sphi %s1295_s22, %s1607_s22   ;;  %s1241_s21 = sphi %s1293_s21, %s1606_s21  }
   0x4   : > { %s1316_s27 = sadd.s32 1, %s1253_s24   ;;  %s162_s28 = sadd.s32 1, %s1249_s23 }
   0x5   : > { %s159_s29 = ssub.s32 %s1253_s24, %s1316_s27  ;;  %p172_p0 = scmp.ne.s32.totalorder %s1249_s23, %s1245_s22 }
   0x6   : > { %p160_p1 = scmp.eq.s32.totalorder %s159_s29, 0  ;;  %p173_p2 = scmp.eq.s32.totalorder %s1022_s25, 1 }
   0x7   : > { %p178_p3 = scmp.ne.s32.totalorder %s1245_s22, %s1241_s21  ;;  %p179_p4 = scmp.eq.s32.totalorder %s1023_s26, 1 }
   0x8   : > { %s1326_s30 = scalar_select %p160_p1, %s1249_s23, %s162_s28  }
   0x9   : > { %p1328_p5 = por %p173_p2, %p172_p0  ;;  %p1332_p6 = por %p179_p4, %p178_p3 }
   0xa   : > { %p1026_p7 = scmp.ge.s32.totalorder %s1253_s24, 1  ;;  %p227_p8 = scmp.lt.s32.totalorder %s1253_s24, 3 }
   0xc   : > { %p228_p9 = pnand %p1026_p7, %p227_p8 }
   0xd   : > { %s1341_s11 = sshll.u32 (!%p228_p9), %s1022_s25, 4  ;;  %s259_s13 = sand.u32 (!%p228_p9), 1, %s1245_s22  }
   0xe   : > { %231 = sbr.rel (%p228_p9) target bundleno = 236 (0xec), region = 44  ;;  %p263_p10 = scmp.lt.s32.totalorder (!%p228_p9), %s1341_s11, 31 }
   0xf   : > { %s1027_s14 = sshll.u32 (!%p228_p9), %s259_s13, 4  ;;  %s1211_s9 = scalar_lea.hbm (!%p228_p9), %s1603_s6, 32 }
  0x10   : > { %s261_s18 = scalar_lea.vmem (!%p228_p9), [#allocation2], %s1027_s14 }
  0x11   : > { %s946_s19 = sshll.u32 (!%p228_p9), %s261_s18, 4  ;;  %s947_s19 = int_to_ptr.vmem [resolvable:$true] %s946_s19 }
  0x13   : > { %v1099_v0 = vld [vmem:[%s1599_s2 + $0x8] sm:$0xff]  ;;  %v1100_v1 = vld [vmem:[%s1601_s4] sm:$0xff]  ;;  %v1255_v2 = vmov 8.0   ;;  %s264_s16 = scalar_select %p263_p10, %s1341_s11, 31  ;;  %vm352_vm0 = vcmask 261120   ;;  %vm593_vm1 = vcmask 130048  }
  0x14   : > { %1189 = vrcp.f32 %v1255_v2  ;;  %383 = vmatpush.bf16.msra.mxu0 %v1099_v0  ;;  %1141 = vmatpush.bf16.msra.mxu2 %v1099_v0  ;;  %v1098_v3 = vld [vmem:[%s1599_s2] sm:$0xff]  ;;  %vm772_vm3 = vcmask 1041409   ;;  %vm774_vm4 = vcmask 1042434   ;;  %vm776_vm5 = vcmask 1043459  }
  0x15   : > { %1142 = vmatpush.bf16.msra.mxu3 %v1099_v0  ;;  %810 = vmatpush.bf16.msra.mxu1 %v1100_v1  ;;  %s1029_s17 = sshll.u32 %s264_s16, 2  ;;  %vm778_vm6 = vcmask 1044484   ;;  %vm780_vm7 = vcmask 1045509   ;;  %vm782_vm8 = vcmask 1046534   ;;  %vm784_vm9 = vcmask 1047559  }
  0x16   : > { %s1354_s20 = scalar_lea.vmem %s1597_s0, %s1029_s17  ;;  %s1359_s28 = scalar_lea.vmem %s1598_s1, %s1029_s17 }
  0x17   : > { %v1090_v5 = vld [vmem:[%s1354_s20] sm:$0xff]  ;;  %v1093_v6 = vld [vmem:[%s1354_s20 + $0x18] sm:$0xff]  ;;  %v1096_v7 = vld [vmem:[%s1354_s20 + $0x30] sm:$0xff]  ;;  %s945_s17 = scalar_lea.hbm %s1603_s6, %s1341_s11  ;;  %s934_s11 = scalar_lea.sflag [#allocation3], %s259_s13 }
  0x18   : > { %384 = vmatpush.bf16.msra.mxu0 %v1098_v3  ;;  %1143 = vmatpush.bf16.msra.mxu2 %v1098_v3  ;;  %v1103_v9 = vld [vmem:[%s1359_s28] sm:$0xff]   ;;  %v1134_v10 = vld [vmem:[%s1359_s28 + $0x8] sm:$0xff]   ;;  %v1135_v13 = vld [vmem:[%s1359_s28 + $0x10] sm:$0xff]  }
  0x19   : > { %1144 = vmatpush.bf16.msra.mxu3 %v1098_v3  ;;  %v1104_v12 = vunpack.c.l.bf16 %v1103_v9  ;;  %v1136_v14 = vld [vmem:[%s1359_s28 + $0x18] sm:$0xff]   ;;  %v1105_v15 = vunpack.c.h.bf16 %v1103_v9  ;;  %v1108_v16 = vunpack.c.l.bf16 %v1134_v10  ;;  %v1109_v17 = vunpack.c.h.bf16 %v1134_v10  ;;  %v1375_v18 = vld [vmem:[%s1359_s28 + $0x20] sm:$0xff]   ;;  %v1378_v19 = vld [vmem:[%s1359_s28 + $0x28] sm:$0xff]  }
  0x1a   : > { %v1361_v4 = vpop.eup %1189  ;;  %v1112_v21 = vunpack.c.l.bf16 %v1135_v13  ;;  %v1113_v22 = vunpack.c.h.bf16 %v1135_v13  ;;  %v1116_v23 = vunpack.c.l.bf16 %v1136_v14  ;;  %v1117_v24 = vunpack.c.h.bf16 %v1136_v14  ;;  %v1091_v53 = vld [vmem:[%s1354_s20 + $0x8] sm:$0xff]  ;;  %v1094_v54 = vld [vmem:[%s1354_s20 + $0x20] sm:$0xff]  ;;  %v1139_v55 = vld [vmem:[%s1359_s28 + $0x30] sm:$0xff]  }
  0x1b   : > { %v539_v8 = vmul.f32 8.0, %v1361_v4  ;;  %1072 = vmatmul.msk.bf16.vlgmr.msra.gmra.mxu0 %vm352_vm0, %v1090_v5  ;;  %1075 = vmatmul.msk.bf16.vlgmr.msra.gmra.mxu2 %vm352_vm0, %v1093_v6  ;;  %v1120_v25 = vunpack.c.l.bf16 %v1375_v18  ;;  %v1121_v26 = vunpack.c.h.bf16 %v1375_v18  ;;  %v1124_v27 = vunpack.c.l.bf16 %v1378_v19  ;;  %v1097_v60 = vld [vmem:[%s1354_s20 + $0x38] sm:$0xff] }
  0x1c   : > { %1078 = vmatmul.msk.bf16.vlgmr.msra.gmra.mxu3 %vm352_vm0, %v1096_v7  ;;  %v594_v28 = vsel %vm593_vm1, %v1104_v12, 0.0  ;;  %vm543_vm2 = vweird.f32 %v1361_v4  ;;  %v601_v30 = vsel %vm593_vm1, %v1105_v15, 0.0  ;;  %v608_v31 = vsel %vm593_vm1, %v1108_v16, 0.0  ;;  %v1140_v1 = vld [vmem:[%s1359_s28 + $0x38] sm:$0xff]  }
  0x1d   : > { %v540_v11 = vsub.f32 1.0, %v539_v8  ;;  %v595_v29 = vrot.slane %v594_v28, 4  ;;  %v615_v32 = vsel %vm593_vm1, %v1109_v17, 0.0  ;;  %v602_v34 = vrot.slane %v601_v30, 4 }
  0x1e   : > { %v609_v35 = vrot.slane %v608_v31, 4  ;;  %v616_v36 = vrot.slane %v615_v32, 4  ;;  %v622_v38 = vsel %vm593_vm1, %v1112_v21, 0.0  ;;  %v629_v39 = vsel %vm593_vm1, %v1113_v22, 0.0 }
  0x1f   : > { %v541_v20 = vmul.f32 %v1361_v4, %v540_v11  ;;  %v596_v37 = vadd.f32 %v595_v29, %v594_v28  ;;  %v636_v40 = vsel %vm593_vm1, %v1116_v23, 0.0  ;;  %v603_v41 = vadd.f32 %v602_v34, %v601_v30 }
  0x20   : > { %v610_v42 = vadd.f32 %v609_v35, %v608_v31  ;;  %v617_v43 = vadd.f32 %v616_v36, %v615_v32  ;;  %v623_v44 = vrot.slane %v622_v38, 4  ;;  %v630_v46 = vrot.slane %v629_v39, 4 }
  0x21   : > { %v542_v33 = vadd.f32 %v1361_v4, %v541_v20  ;;  %v597_v45 = vrot.slane %v596_v37, 2  ;;  %v637_v47 = vrot.slane %v636_v40, 4  ;;  %v643_v48 = vsel %vm593_vm1, %v1117_v24, 0.0 }
  0x22   : > { %v604_v49 = vrot.slane %v603_v41, 2  ;;  %v611_v50 = vrot.slane %v610_v42, 2  ;;  %v618_v51 = vrot.slane %v617_v43, 2  ;;  %v624_v52 = vadd.f32 %v623_v44, %v622_v38 }
  0x23   : > { %v598_v56 = vadd.f32 %v597_v45, %v596_v37  ;;  %v631_v57 = vadd.f32 %v630_v46, %v629_v39  ;;  %v638_v58 = vadd.f32 %v637_v47, %v636_v40  ;;  %v644_v59 = vrot.slane %v643_v48, 4 }
  0x24   : > { %v605_v61 = vadd.f32 %v604_v49, %v603_v41  ;;  %v612_v62 = vadd.f32 %v611_v50, %v610_v42  ;;  %v1398_v63 = vadd.f32 %v618_v51, %v617_v43  ;;  %v625_v0 = vrot.slane %v624_v52, 2 }
  0x25   : > { %v599_v2 = vrot.slane %v598_v56, 1  ;;  %v632_v3 = vrot.slane %v631_v57, 2  ;;  %v639_v5 = vrot.slane %v638_v58, 2  ;;  %v645_v6 = vadd.f32 %v644_v59, %v643_v48 }
  0x26   : > { %v1125_v7 = vunpack.c.h.bf16 %v1378_v19  ;;  %v1128_v8 = vunpack.c.l.bf16 %v1139_v55  ;;  %v606_v9 = vrot.slane %v605_v61, 1  ;;  %v613_v10 = vrot.slane %v612_v62, 1 }
  0x27   : > { %v1129_v11 = vunpack.c.h.bf16 %v1139_v55  ;;  %v626_v12 = vadd.f32 %v625_v0, %v624_v52  ;;  %v633_v13 = vadd.f32 %v632_v3, %v631_v57  ;;  %v1404_v14 = vadd.f32 %v639_v5, %v638_v58  ;;  %v1095_v0 = vld [vmem:[%s1354_s20 + $0x28] sm:$0xff] }
  0x28   : > { %v1410_v15 = vsel %vm543_vm2, %v1361_v4, %v542_v33  ;;  %v1132_v16 = vunpack.c.l.bf16 %v1140_v1  ;;  %v1133_v17 = vunpack.c.h.bf16 %v1140_v1  ;;  %v620_v20 = vrot.slane %v1398_v63, 1 }
  0x29   : > { %v1413_v21 = vadd.f32 %v599_v2, %v598_v56  ;;  %v1415_v22 = vadd.f32 %v606_v9, %v605_v61  ;;  %v646_v23 = vrot.slane %v645_v6, 2  ;;  %v650_v24 = vsel %vm593_vm1, %v1120_v25, 0.0 }
  0x2a   : > { %v1420_v28 = vadd.f32 %v613_v10, %v612_v62  ;;  %v651_v29 = vrot.slane %v650_v24, 4  ;;  %v657_v4 = vsel %vm593_vm1, %v1121_v26, 0.0  ;;  %v664_v30 = vsel %vm593_vm1, %v1124_v27, 0.0  ;;  %v1092_v62 = vld [vmem:[%s1354_s20 + $0x10] sm:$0xff]  ;;  %s1560_s20 = sshll.u32 %s945_s17, 4  ;;  %s949_s20 = int_to_ptr.hbm [resolvable:$true] %s1560_s20 }
  0x2b   : > { %1073 = vmatmul.msk.bf16.gmra.mxu0 %vm352_vm0, %v1091_v53  ;;  %1076 = vmatmul.msk.bf16.gmra.mxu2 %vm352_vm0, %v1094_v54  ;;  %v627_v31 = vrot.slane %v626_v12, 1  ;;  %v634_v32 = vrot.slane %v633_v13, 1  ;;  %v641_v33 = vrot.slane %v1404_v14, 1  ;;  %v658_v34 = vrot.slane %v657_v4, 4  ;;  %s1205_s25 = sshra.s32 %s949_s20, 4  ;;  %s1206_s25 = int_to_ptr.hbm [resolvable:$true] %s1205_s25 }
  0x2c   : > { %1079 = vmatmul.msk.bf16.gmra.mxu3 %vm352_vm0, %v1097_v60  ;;  %v652_v35 = vadd.f32 %v651_v29, %v650_v24  ;;  %v665_v36 = vrot.slane %v664_v30, 4  ;;  %v671_v25 = vsel %vm593_vm1, %v1125_v7, 0.0  ;;  %v678_v37 = vsel %vm593_vm1, %v1128_v8, 0.0  ;;  %s1207_s26 = scalar_lea.hbm %s1206_s25, 16  ;;  %p1212_p0 = scmp.lt.s32.totalorder %s1206_s25, %s1603_s6 }
  0x2d   : > { %v647_v38 = vadd.f32 %v646_v23, %v645_v6  ;;  %v659_v39 = vadd.f32 %v658_v34, %v657_v4  ;;  %v672_v18 = vrot.slane %v671_v25, 4  ;;  %v679_v40 = vrot.slane %v678_v37, 4  ;;  %p1208_p11 = scmp.ne.s32.totalorder %s1206_s25, %s1207_s26  ;;  %p1213_p1 = scmp.lt.s32.totalorder %s1211_s9, %s1207_s26 }
  0x2e   : > { %v653_v26 = vrot.slane %v652_v35, 2  ;;  %v666_v41 = vadd.f32 %v665_v36, %v664_v30  ;;  %v685_v19 = vsel %vm593_vm1, %v1129_v11, 0.0  ;;  %v692_v27 = vsel %vm593_vm1, %v1132_v16, 0.0 }
  0x2f   : > { %v660_v42 = vrot.slane %v659_v39, 2  ;;  %v673_v43 = vadd.f32 %v672_v18, %v671_v25  ;;  %v680_v44 = vadd.f32 %v679_v40, %v678_v37  ;;  %v686_v45 = vrot.slane %v685_v19, 4  ;;  %p1209_p12 = pnand %p1208_p11, %p1328_p5  ;;  %p1214_p2 = por %p1213_p1, %p1212_p0 }
  0x30   : > { %v654_v46 = vadd.f32 %v653_v26, %v652_v35  ;;  %v667_v47 = vrot.slane %v666_v41, 2  ;;  %v693_v48 = vrot.slane %v692_v27, 4  ;;  %v699_v49 = vsel %vm593_vm1, %v1133_v17, 0.0 }
  0x31   : > { %v661_v50 = vadd.f32 %v660_v42, %v659_v39  ;;  %v674_v51 = vrot.slane %v673_v43, 2  ;;  %v681_v52 = vrot.slane %v680_v44, 2  ;;  %v687_v53 = vadd.f32 %v686_v45, %v685_v19  ;;  %p1210_p13 = pneg %p1209_p12 }
  0x32   : > { %v655_v54 = vrot.slane %v654_v46, 1  ;;  %v668_v55 = vadd.f32 %v667_v47, %v666_v41  ;;  %v694_v56 = vadd.f32 %v693_v48, %v692_v27  ;;  %v700_v57 = vrot.slane %v699_v49, 4 }
  0x33   : > { %v662_v58 = vrot.slane %v661_v50, 1  ;;  %v675_v59 = vadd.f32 %v674_v51, %v673_v43  ;;  %v682_v60 = vadd.f32 %v681_v52, %v680_v44  ;;  %v688_v61 = vrot.slane %v687_v53, 2  ;;  %p1215_p3 = pnand %p1214_p2, %p1210_p13 }
  0x34   : > { %v648_v1 = vrot.slane %v647_v38, 1  ;;  %v669_v2 = vrot.slane %v668_v55, 1  ;;  %v695_v3 = vrot.slane %v694_v56, 2  ;;  %v701_v5 = vadd.f32 %v700_v57, %v699_v49 }
  0x35   : > { %v621_v6 = vadd.f32 %v620_v20, %v1398_v63  ;;  %v676_v7 = vrot.slane %v675_v59, 1  ;;  %v683_v8 = vrot.slane %v682_v60, 1  ;;  %v689_v9 = vadd.f32 %v688_v61, %v687_v53 }
  0x36   : > { %v628_v10 = vadd.f32 %v627_v31, %v626_v12  ;;  %v635_v11 = vadd.f32 %v634_v32, %v633_v13  ;;  %v696_v16 = vadd.f32 %v695_v3, %v694_v56  ;;  %v702_v17 = vrot.slane %v701_v5, 2 }
  0x37   : > { %v642_v23 = vadd.f32 %v641_v33, %v1404_v14  ;;  %v656_v24 = vadd.f32 %v655_v54, %v654_v46  ;;  %v663_v29 = vadd.f32 %v662_v58, %v661_v50  ;;  %v690_v4 = vrot.slane %v689_v9, 1 }
  0x38   : > { %v649_v30 = vadd.f32 %v648_v1, %v647_v38  ;;  %v670_v34 = vadd.f32 %v669_v2, %v668_v55  ;;  %v697_v35 = vrot.slane %v696_v16, 1  ;;  %v703_v63 = vadd.f32 %v702_v17, %v701_v5 }
  0x39   : > { %v677_v20 = vadd.f32 %v676_v7, %v675_v59  ;;  %v684_v36 = vadd.f32 %v683_v8, %v682_v60  ;;  %v691_v25 = vadd.f32 %v690_v4, %v689_v9  ;;  %v706_v12 = vmul.f32 %v1413_v21, %v1410_v15 }
  0x3a   : > { %v698_v13 = vadd.f32 %v697_v35, %v696_v16  ;;  %v704_v31 = vrot.slane %v703_v63, 1  ;;  %v707_v14 = vmul.f32 %v1415_v22, %v1410_v15  ;;  %v708_v32 = vmul.f32 %v1420_v28, %v1410_v15 }
  0x3b   : > { %1074 = vmatmul.msk.bf16.gmra.mxu0 %vm352_vm0, %v1092_v62  ;;  %1077 = vmatmul.msk.bf16.gmra.mxu2 %vm352_vm0, %v1095_v0  ;;  %v709_v33 = vmul.f32 %v621_v6, %v1410_v15  ;;  %v710_v37 = vmul.f32 %v628_v10, %v1410_v15  ;;  %v714_v38 = vmul.f32 %v656_v24, %v1410_v15 }
  0x3c   : > { %v715_v39 = vmul.f32 %v663_v29, %v1410_v15  ;;  %v705_v18 = vadd.f32 %v704_v31, %v703_v63  ;;  %v711_v40 = vmul.f32 %v635_v11, %v1410_v15  ;;  %v712_v21 = vmul.f32 %v642_v23, %v1410_v15 }
  0x3d   : > { %v716_v26 = vmul.f32 %v670_v34, %v1410_v15  ;;  %v713_v22 = vmul.f32 %v649_v30, %v1410_v15  ;;  %v717_v41 = vmul.f32 %v677_v20, %v1410_v15  ;;  %v718_v28 = vmul.f32 %v684_v36, %v1410_v15 }
  0x3e   : > { %v719_v19 = vmul.f32 %v691_v25, %v1410_v15  ;;  %v720_v27 = vmul.f32 %v698_v13, %v1410_v15  ;;  %v721_v42 = vmul.f32 %v705_v18, %v1410_v15  ;;  %v722_v43 = vpack.c.bf16 %v706_v12, %v706_v12 }
  0x3f   : > { %v723_v44 = vpack.c.bf16 %v707_v14, %v707_v14  ;;  %v724_v45 = vpack.c.bf16 %v708_v32, %v708_v32  ;;  %v725_v46 = vpack.c.bf16 %v709_v33, %v709_v33  ;;  %v730_v47 = vpack.c.bf16 %v714_v38, %v714_v38  ;;  %v1477_v32 = vld [vmem:[%s1600_s3] ss:$0 sm:$0xff] }
  0x40   : > { %v731_v48 = vpack.c.bf16 %v715_v39, %v715_v39  ;;  %v726_v49 = vpack.c.bf16 %v710_v37, %v710_v37  ;;  %v727_v50 = vpack.c.bf16 %v711_v40, %v711_v40  ;;  %v728_v51 = vpack.c.bf16 %v712_v21, %v712_v21 }
  0x41   : > { %v732_v52 = vpack.c.bf16 %v716_v26, %v716_v26  ;;  %v729_v53 = vpack.c.bf16 %v713_v22, %v713_v22  ;;  %v733_v54 = vpack.c.bf16 %v717_v41, %v717_v41  ;;  %v734_v55 = vpack.c.bf16 %v718_v28, %v718_v28 }
  0x42   : > { %v735_v56 = vpack.c.bf16 %v719_v19, %v719_v19  ;;  %v736_v57 = vpack.c.bf16 %v720_v27, %v720_v27  ;;  %v737_v58 = vpack.c.bf16 %v721_v42, %v721_v42  ;;  %v756_v59 = vunpack.c.l.b16 %v722_v43 }
  0x43   : > { %v757_v60 = vunpack.c.l.b16 %v723_v44  ;;  %v758_v61 = vunpack.c.l.b16 %v724_v45  ;;  %v759_v62 = vunpack.c.l.b16 %v725_v46  ;;  %v764_v0 = vunpack.c.l.b16 %v730_v47 }
  0x44   : > { %v765_v1 = vunpack.c.l.b16 %v731_v48  ;;  %v760_v2 = vunpack.c.l.b16 %v726_v49  ;;  %v761_v3 = vunpack.c.l.b16 %v727_v50  ;;  %v762_v5 = vunpack.c.l.b16 %v728_v51 }
  0x45   : > { %v766_v6 = vunpack.c.l.b16 %v732_v52  ;;  %v767_v7 = vunpack.c.l.b16 %v733_v54  ;;  %v763_v8 = vunpack.c.l.b16 %v729_v53  ;;  %v768_v9 = vunpack.c.l.b16 %v734_v55 }
  0x46   : > { %v773_v10 = vsel %vm772_vm3, %v757_v60, %v756_v59  ;;  %v769_v11 = vunpack.c.l.b16 %v735_v56  ;;  %v786_v17 = vsel %vm772_vm3, %v765_v1, %v764_v0  ;;  %v770_v23 = vunpack.c.l.b16 %v736_v57 }
  0x47   : > { %v775_v16 = vsel %vm774_vm4, %v758_v61, %v773_v10  ;;  %v787_v29 = vsel %vm774_vm4, %v766_v6, %v786_v17  ;;  %v771_v4 = vunpack.c.l.b16 %v737_v58 }
  0x48   : > { %v777_v24 = vsel %vm776_vm5, %v759_v62, %v775_v16  ;;  %v788_v34 = vsel %vm776_vm5, %v767_v7, %v787_v29 }
  0x49   : > { %v779_v30 = vsel %vm778_vm6, %v760_v2, %v777_v24  ;;  %v789_v63 = vsel %vm778_vm6, %v768_v9, %v788_v34 }
  0x4a   : > { %v781_v35 = vsel %vm780_vm7, %v761_v3, %v779_v30  ;;  %v790_v36 = vsel %vm780_vm7, %v769_v11, %v789_v63 }
  0x4b   : > { %v783_v20 = vsel %vm782_vm8, %v762_v5, %v781_v35  ;;  %v791_v12 = vsel %vm782_vm8, %v770_v23, %v790_v36 }
  0x4c   : > { %v785_v25 = vsel %vm784_vm9, %v763_v8, %v783_v20  ;;  %v792_v13 = vsel %vm784_vm9, %v771_v4, %v791_v12 }
  0x4d   : > { %v793_v31 = vpack.c.b16 %v792_v13, %v785_v25 }
  0x4f   : > { %1084 = vmatmul.msk.bf16.vlgmr.msra.gmra.mxu1 %vm593_vm1, %v793_v31 }
  0x98   : > { %v386_v14 = vpop.f32.mrf.mxu0 }
  0x99   : > { %v387_v39 = vadd.f32 %v1477_v32, %v386_v14 }
  0x9b   : > { %v426_v18 = vmax.f32 %v387_v39, 0.0 }
  0x9d   : > { %v442_v41 = vrot.slane %v426_v18, 4 }
  0x9e   : > { %v401_v33 = vpop.f32.mrf.mxu2 }
  0x9f   : > { %v416_v37 = vpop.f32.mrf.mxu3  ;;  %v402_v21 = vadd.f32 %v1477_v32, %v401_v33  ;;  %v443_v27 = vadd.f32 %v442_v41, %v426_v18 }
  0xa0   : > { %v388_v38 = vpop.f32.mrf.mxu0  ;;  %v417_v28 = vadd.f32 %v1477_v32, %v416_v37 }
  0xa1   : > { %v432_v19 = vmax.f32 %v402_v21, 0.0  ;;  %v389_v42 = vadd.f32 %v1477_v32, %v388_v38  ;;  %v444_v52 = vrot.slane %v443_v27, 2 }
  0xa2   : > { %v438_v43 = vmax.f32 %v417_v28, 0.0 }
  0xa3   : > { %v478_v47 = vrot.slane %v432_v19, 4  ;;  %v427_v53 = vmax.f32 %v389_v42, 0.0  ;;  %v445_v0 = vadd.f32 %v444_v52, %v443_v27 }
  0xa4   : > { %v514_v55 = vrot.slane %v438_v43, 4 }
  0xa5   : > { %v479_v58 = vadd.f32 %v478_v47, %v432_v19  ;;  %v448_v1 = vrot.slane %v427_v53, 4  ;;  %v446_v23 = vrot.slane %v445_v0, 1 }
  0xa6   : > { %v403_v40 = vpop.f32.mrf.mxu2  ;;  %v515_v2 = vadd.f32 %v514_v55, %v438_v43 }
  0xa7   : > { %v418_v26 = vpop.f32.mrf.mxu3  ;;  %v404_v44 = vadd.f32 %v1477_v32, %v403_v40  ;;  %v480_v7 = vrot.slane %v479_v58, 2  ;;  %v449_v24 = vadd.f32 %v448_v1, %v427_v53  ;;  %v447_v18 = vadd.f32 %v446_v23, %v445_v0 }
  0xa8   : > { %v391_v22 = vpop.f32.mrf.mxu0  ;;  %v419_v45 = vadd.f32 %v1477_v32, %v418_v26  ;;  %v516_v34 = vrot.slane %v515_v2, 2 }
  0xa9   : > { %v392_v48 = vadd.f32 %v1477_v32, %v391_v22  ;;  %v433_v56 = vmax.f32 %v404_v44, 0.0  ;;  %v481_v36 = vadd.f32 %v480_v7, %v479_v58  ;;  %v450_v37 = vrot.slane %v449_v24, 2 }
  0xaa   : > { %v439_v57 = vmax.f32 %v419_v45, 0.0  ;;  %v517_v40 = vadd.f32 %v516_v34, %v515_v2  ;;  %v1495_v55 = vmul.f32 %v1410_v15, %v447_v18 }
  0xab   : > { %v428_v59 = vmax.f32 %v392_v48, 0.0  ;;  %v484_v3 = vrot.slane %v433_v56, 4  ;;  %v482_v41 = vrot.slane %v481_v36, 1  ;;  %v451_v47 = vadd.f32 %v450_v37, %v449_v24 }
  0xac   : > { %v520_v5 = vrot.slane %v439_v57, 4 }
  0xad   : > { %v454_v8 = vrot.slane %v428_v59, 4  ;;  %v485_v35 = vadd.f32 %v484_v3, %v433_v56  ;;  %v483_v0 = vadd.f32 %v482_v41, %v481_v36 }
  0xae   : > { %v406_v46 = vpop.f32.mrf.mxu2  ;;  %v521_v63 = vadd.f32 %v520_v5, %v439_v57  ;;  %v452_v5 = vrot.slane %v451_v47, 1 }
  0xaf   : > { %v421_v49 = vpop.f32.mrf.mxu3  ;;  %v407_v50 = vadd.f32 %v1477_v32, %v406_v46  ;;  %v455_v25 = vadd.f32 %v454_v8, %v428_v59  ;;  %v486_v21 = vrot.slane %v485_v35, 2 }
  0xb0   : > { %v393_v51 = vpop.f32.mrf.mxu0  ;;  %v422_v60 = vadd.f32 %v1477_v32, %v421_v49  ;;  %v522_v26 = vrot.slane %v521_v63, 2  ;;  %v453_v36 = vadd.f32 %v452_v5, %v451_v47  ;;  %v1518_v5 = vld [vmem:[%s1602_s5] ss:$0 sm:$0xff] }
  0xb1   : > { %v394_v54 = vadd.f32 %v1477_v32, %v393_v51  ;;  %v434_v61 = vmax.f32 %v407_v50, 0.0  ;;  %v456_v28 = vrot.slane %v455_v25, 2  ;;  %v518_v51 = vrot.slane %v517_v40, 1 }
  0xb2   : > { %v440_v9 = vmax.f32 %v422_v60, 0.0  ;;  %v487_v52 = vadd.f32 %v486_v21, %v485_v35  ;;  %v523_v53 = vadd.f32 %v522_v26, %v521_v63 }
  0xb3   : > { %v429_v62 = vmax.f32 %v394_v54, 0.0  ;;  %v490_v11 = vrot.slane %v434_v61, 4  ;;  %v457_v56 = vadd.f32 %v456_v28, %v455_v25 }
  0xb4   : > { %v526_v12 = vrot.slane %v440_v9, 4  ;;  %v488_v7 = vrot.slane %v487_v52, 1  ;;  %v524_v8 = vrot.slane %v523_v53, 1 }
  0xb5   : > { %v460_v16 = vrot.slane %v429_v62, 4  ;;  %v491_v31 = vadd.f32 %v490_v11, %v434_v61 }
  0xb6   : > { %v408_v6 = vpop.f32.mrf.mxu2  ;;  %v527_v19 = vadd.f32 %v526_v12, %v440_v9  ;;  %v489_v25 = vadd.f32 %v488_v7, %v487_v52  ;;  %v525_v12 = vadd.f32 %v524_v8, %v523_v53 }
  0xb7   : > { %v409_v10 = vadd.f32 %v1477_v32, %v408_v6  ;;  %v423_v30 = vpop.f32.mrf.mxu3  ;;  %v461_v14 = vadd.f32 %v460_v16, %v429_v62  ;;  %v492_v42 = vrot.slane %v491_v31, 2  ;;  %v519_v6 = vadd.f32 %v518_v51, %v517_v40 }
  0xb8   : > { %v396_v17 = vpop.f32.mrf.mxu0  ;;  %v424_v20 = vadd.f32 %v1477_v32, %v423_v30  ;;  %v528_v57 = vrot.slane %v527_v19, 2  ;;  %v552_v28 = vmul.f32 %v1410_v15, %v489_v25 }
  0xb9   : > { %v435_v29 = vmax.f32 %v409_v10, 0.0  ;;  %v397_v4 = vadd.f32 %v1477_v32, %v396_v17  ;;  %v462_v43 = vrot.slane %v461_v14, 2  ;;  %v493_v59 = vadd.f32 %v492_v42, %v491_v31 }
  0xba   : > { %v441_v39 = vmax.f32 %v424_v20, 0.0  ;;  %v458_v10 = vrot.slane %v457_v56, 1  ;;  %v551_v20 = vmul.f32 %v1410_v15, %v483_v0  ;;  %v1501_v41 = vmul.f32 %v1410_v15, %v519_v6 }
  0xbb   : > { %v430_v13 = vmax.f32 %v397_v4, 0.0  ;;  %v496_v33 = vrot.slane %v435_v29, 4  ;;  %v463_v60 = vadd.f32 %v462_v43, %v461_v14  ;;  %v494_v23 = vrot.slane %v493_v59, 1 }
  0xbc   : > { %v532_v49 = vrot.slane %v441_v39, 4 }
  0xbd   : > { %v466_v38 = vrot.slane %v430_v13, 4  ;;  %v497_v44 = vadd.f32 %v496_v33, %v435_v29  ;;  %v464_v24 = vrot.slane %v463_v60, 1  ;;  %v529_v29 = vadd.f32 %v528_v57, %v527_v19 }
  0xbe   : > { %v411_v22 = vpop.f32.mrf.mxu2  ;;  %v533_v2 = vadd.f32 %v532_v49, %v441_v39  ;;  %v495_v37 = vadd.f32 %v494_v23, %v493_v59  ;;  %v1505_v19 = vmul.f32 %v1410_v15, %v525_v12 }
  0xbf   : > { %v467_v27 = vadd.f32 %v466_v38, %v430_v13  ;;  %v412_v45 = vadd.f32 %v1477_v32, %v411_v22  ;;  %v498_v61 = vrot.slane %v497_v44, 2  ;;  %v459_v13 = vadd.f32 %v458_v10, %v457_v56 }
  0xc0   : > { %v398_v46 = vpop.f32.mrf.mxu0  ;;  %v534_v34 = vrot.slane %v533_v2, 2  ;;  %v465_v38 = vadd.f32 %v464_v24, %v463_v60  ;;  %v546_v22 = vmul.f32 %v1410_v15, %v453_v36 }
  0xc1   : > { %v468_v48 = vrot.slane %v467_v27, 2  ;;  %v399_v50 = vadd.f32 %v1477_v32, %v398_v46  ;;  %v436_v54 = vmax.f32 %v412_v45, 0.0  ;;  %v499_v4 = vadd.f32 %v498_v61, %v497_v44 }
  0xc2   : > { %v535_v40 = vadd.f32 %v534_v34, %v533_v2  ;;  %v1509_v45 = vmul.f32 %v1410_v15, %v495_v37  ;;  %v548_v46 = vmul.f32 %v1410_v15, %v465_v38 }
  0xc3   : > { %v431_v58 = vmax.f32 %v399_v50, 0.0  ;;  %v502_v62 = vrot.slane %v436_v54, 4  ;;  %v469_v1 = vadd.f32 %v468_v48, %v467_v27  ;;  %v500_v39 = vrot.slane %v499_v4, 1 }
  0xc4   : > { %v547_v27 = vmul.f32 %v1410_v15, %v459_v13  ;;  %v536_v51 = vrot.slane %v535_v40, 1 }
  0xc5   : > { %v472_v3 = vrot.slane %v431_v58, 4  ;;  %v503_v11 = vadd.f32 %v502_v62, %v436_v54  ;;  %v470_v30 = vrot.slane %v469_v1, 1  ;;  %v501_v48 = vadd.f32 %v500_v39, %v499_v4 }
  0xc6   : > { %v413_v9 = vpop.f32.mrf.mxu2 }
  0xc7   : > { %v473_v16 = vadd.f32 %v472_v3, %v431_v58  ;;  %v414_v17 = vadd.f32 %v1477_v32, %v413_v9  ;;  %v504_v31 = vrot.slane %v503_v11, 2  ;;  %v530_v32 = vrot.slane %v529_v29, 1 }
  0xc8   : > { %v471_v18 = vadd.f32 %v470_v30, %v469_v1 }
  0xc9   : > { %v474_v35 = vrot.slane %v473_v16, 2  ;;  %v437_v63 = vmax.f32 %v414_v17, 0.0  ;;  %v505_v42 = vadd.f32 %v504_v31, %v503_v11  ;;  %v531_v47 = vadd.f32 %v530_v32, %v529_v29 }
  0xca   : > { %v549_v50 = vmul.f32 %v1410_v15, %v471_v18  ;;  %v537_v17 = vadd.f32 %v536_v51, %v535_v40 }
  0xcb   : > { %v475_v14 = vadd.f32 %v474_v35, %v473_v16  ;;  %v508_v33 = vrot.slane %v437_v63, 4  ;;  %v506_v61 = vrot.slane %v505_v42, 1  ;;  %v554_v35 = vmul.f32 %v1410_v15, %v501_v48 }
  0xcc   : > { %v812_v49 = vpop.f32.mrf.mxu1  ;;  %v560_v31 = vmul.f32 %v1410_v15, %v537_v17 }
  0xcd   : > { %v476_v21 = vrot.slane %v475_v14, 1  ;;  %v509_v26 = vadd.f32 %v508_v33, %v437_v63  ;;  %v819_v54 = vrot.slane %v812_v49, 1  ;;  %v820_v56 = vrot.slane %v812_v49, 2 }
  0xce   : > { %v821_v57 = vrot.slane %v812_v49, 3  ;;  %v824_v58 = vrot.slane %v812_v49, 6  ;;  %v825_v59 = vrot.slane %v812_v49, 7  ;;  %v822_v60 = vrot.slane %v812_v49, 4 }
  0xcf   : > { %v477_v43 = vadd.f32 %v476_v21, %v475_v14  ;;  %v510_v44 = vrot.slane %v509_v26, 2  ;;  %v823_v62 = vrot.slane %v812_v49, 5  ;;  %v849_v0 = vadd.f32 %v812_v49, %v1495_v55 }
  0xd0   : > { %v850_v1 = vadd.f32 %v819_v54, %v546_v22  ;;  %v851_v2 = vadd.f32 %v820_v56, %v547_v27  ;;  %v852_v3 = vadd.f32 %v821_v57, %v548_v46  ;;  %v855_v6 = vadd.f32 %v824_v58, %v551_v20 }
  0xd1   : > { %v550_v52 = vmul.f32 %v1410_v15, %v477_v43  ;;  %v511_v53 = vadd.f32 %v510_v44, %v509_v26  ;;  %v853_v7 = vadd.f32 %v822_v60, %v549_v50  ;;  %v559_v55 = vmul.f32 %v1410_v15, %v531_v47 }
  0xd2   : > { %v870_v10 = vadd.f32 %v1518_v5, %v850_v1  ;;  %v871_v11 = vadd.f32 %v1518_v5, %v851_v2  ;;  %v872_v16 = vadd.f32 %v1518_v5, %v852_v3  ;;  %v507_v24 = vadd.f32 %v506_v61, %v505_v42 }
  0xd3   : > { %v854_v8 = vadd.f32 %v823_v62, %v550_v52  ;;  %v512_v9 = vrot.slane %v511_v53, 1  ;;  %v873_v23 = vadd.f32 %v1518_v5, %v853_v7  ;;  %v869_v4 = vadd.f32 %v1518_v5, %v849_v0 }
  0xd4   : > { %v901_v30 = vrot.slane %v870_v10, 7  ;;  %v903_v34 = vrot.slane %v871_v11, 6  ;;  %v905_v63 = vrot.slane %v872_v16, 5  ;;  %v814_v20 = vpop.f32.mrf.mxu1  ;;  %v856_v25 = vadd.f32 %v825_v59, %v552_v28 }
  0xd5   : > { %v874_v29 = vadd.f32 %v1518_v5, %v854_v8  ;;  %v513_v36 = vadd.f32 %v512_v9, %v511_v53  ;;  %v875_v12 = vadd.f32 %v1518_v5, %v855_v6  ;;  %v907_v13 = vrot.slane %v873_v23, 4 }
  0xd6   : > { %v826_v14 = vrot.slane %v814_v20, 1  ;;  %v829_v33 = vrot.slane %v814_v20, 4  ;;  %v902_v37 = vsel %vm772_vm3, %v901_v30, %v869_v4  ;;  %v830_v38 = vrot.slane %v814_v20, 5 }
  0xd7   : > { %v555_v32 = vmul.f32 %v1410_v15, %v507_v24  ;;  %v909_v39 = vrot.slane %v874_v29, 3  ;;  %v904_v18 = vsel %vm774_vm4, %v903_v34, %v902_v37  ;;  %v831_v40 = vrot.slane %v814_v20, 6 }
  0xd8   : > { %v832_v21 = vrot.slane %v814_v20, 7  ;;  %v858_v26 = vadd.f32 %v826_v14, %v554_v35  ;;  %v906_v22 = vsel %vm776_vm5, %v905_v63, %v904_v18  ;;  %v556_v28 = vmul.f32 %v1410_v15, %v513_v36 }
  0xd9   : > { %v876_v27 = vadd.f32 %v1518_v5, %v856_v25  ;;  %v911_v42 = vrot.slane %v875_v12, 2  ;;  %v908_v43 = vsel %vm778_vm6, %v907_v13, %v906_v22  ;;  %v861_v44 = vadd.f32 %v829_v33, %v1501_v41 }
  0xda   : > { %v878_v46 = vadd.f32 %v1518_v5, %v858_v26  ;;  %v827_v47 = vrot.slane %v814_v20, 2  ;;  %v857_v48 = vadd.f32 %v814_v20, %v1509_v45  ;;  %v862_v49 = vadd.f32 %v830_v38, %v1505_v19 }
  0xdb   : > { %v828_v50 = vrot.slane %v814_v20, 3  ;;  %v910_v15 = vsel %vm780_vm7, %v909_v39, %v908_v43  ;;  %v863_v51 = vadd.f32 %v831_v40, %v559_v55  ;;  %v864_v52 = vadd.f32 %v832_v21, %v560_v31 }
  0xdc   : > { %v859_v53 = vadd.f32 %v827_v47, %v555_v32  ;;  %v915_v54 = vrot.slane %v878_v46, 7  ;;  %v912_v41 = vsel %vm782_vm8, %v911_v42, %v910_v15  ;;  %v913_v57 = vrot.slane %v876_v27, 1 }
  0xdd   : > { %v860_v56 = vadd.f32 %v828_v50, %v556_v28  ;;  %v881_v58 = vadd.f32 %v1518_v5, %v861_v44  ;;  %v877_v45 = vadd.f32 %v1518_v5, %v857_v48  ;;  %v882_v19 = vadd.f32 %v1518_v5, %v862_v49 }
  0xde   : > { %v879_v59 = vadd.f32 %v1518_v5, %v859_v53  ;;  %v914_v61 = vsel %vm784_vm9, %v913_v57, %v912_v41  ;;  %v883_v62 = vadd.f32 %v1518_v5, %v863_v51  ;;  %v884_v3 = vadd.f32 %v1518_v5, %v864_v52 }
  0xdf   : > { %v880_v60 = vadd.f32 %v1518_v5, %v860_v56  ;;  %931 = vst [vmem:[%s261_s18] sm:$0xff] %v914_v61  ;;  %v916_v1 = vsel %vm772_vm3, %v915_v54, %v877_v45  ;;  %v921_v6 = vrot.slane %v881_v58, 4  ;;  %v923_v8 = vrot.slane %v882_v19, 3 }
  0xe0   : > { %v917_v0 = vrot.slane %v879_v59, 6  ;;  %v925_v11 = vrot.slane %v883_v62, 2  ;;  %v927_v17 = vrot.slane %v884_v3, 1 }
  0xe1   : > { %v919_v2 = vrot.slane %v880_v60, 5 }
  0xe2   : > { %v918_v7 = vsel %vm774_vm4, %v917_v0, %v916_v1 }
  0xe3   : > { %v920_v9 = vsel %vm776_vm5, %v919_v2, %v918_v7 }
  0xe4   : > { %v922_v10 = vsel %vm778_vm6, %v921_v6, %v920_v9 }
  0xe5   : > { %v924_v16 = vsel %vm780_vm7, %v923_v8, %v922_v10 }
  0xe6   : > { %v926_v5 = vsel %vm782_vm8, %v925_v11, %v924_v16 }
  0xe7   : > { %v928_v55 = vsel %vm784_vm9, %v927_v17, %v926_v5 }
  0xe8   : > { %932 = vst [vmem:[%s261_s18 + $0x8] sm:$0xff] %v928_v55 }
  0xe9   : > { %1218 = shalt.err (!%p1215_p3)
}
  0xea   : > { %s1256_s13 = smov 128   ;;  %s1257_s14 = smov 8  }
  0xeb   : > { %1145 = dma.vmem_to_hbm [thread:$0]  (%p1328_p5), %s947_s19, 256, %s949_s20, %s934_s11, %s1256_s13, %s1256_s13, %s1257_s14  }
  0xec PF: > { %p1151_p4 = scmp.ge.s32.totalorder %s1253_s24, 2  ;;  %s963_s15 = sand.u32 1, %s1241_s21  }
  0xed   : > { %s964_s16 = scalar_lea.sflag [#allocation3], %s963_s15 }
  0xee   : > { %p1148_p7 = pnand %p1151_p4, %p1332_p6 }
  0xf0   : > { %p1149_p8 = pneg %p1148_p7 }
  0xf2   : > { %1236 = dma.done.wait (%p1149_p8), %s964_s16, 256  }
  0xf3   : > { %1238 = vsyncadd (%p1149_p8), %s964_s16, 4294967040  ;;  %p16_p9 = scmp.ge.s32.totalorder %s1316_s27, 4   ;;  %s1606_s21 = smov %s1245_s22 }
  0xf4   : > { %s1607_s22 = smov %s1249_s23  ;;  %s1608_s23 = smov %s1326_s30 }
  0xf5   : > { %s1609_s24 = smov %s1316_s27  ;;  %18 = sbr.rel (!%p16_p9) target bundleno = 3 (0x3), region = 82 }
  0xfa   :  { %970 = vsyncpa [#allocation3], 1 }
  0xfb   :  { %972 = vsyncpa [#allocation3 + $0x1], 1 }

</bundles_post_ra>
